<compile_context>
chip_gen: v7x
topology: tpu7x:2x2x1
jax: 0.10.0
libtpu: 0.0.40
codegen_flags: <defaults>
</compile_context>

<pallas_src>
import jax
import jax.numpy as jnp
from jax.experimental import pallas as pl
from jax.experimental.pallas import tpu as pltpu


def _silu(v):
    # v * sigmoid(v); jax.nn.sigmoid lowers to the EUP logistic (no VALU divide).
    return v * jax.nn.sigmoid(v)


def reward_mlp_kernel(x_ref,
                      w0_ref, b0_ref,
                      w1_ref, b1_ref,
                      w2_ref, b2_ref,
                      w3_ref, b3_ref,
                      w4_ref, b4_ref,
                      out_ref):
    # x_ref: (64, TB)  -- features on sublanes, batch on lanes
    h = x_ref[...].astype(jnp.float32)

    # hidden layers: (16, in) @ (in, TB) -> (16, TB), bias (16, 1) lane-broadcast
    h = _silu(jnp.dot(w0_ref[...], h, preferred_element_type=jnp.float32) + b0_ref[...])
    h = _silu(jnp.dot(w1_ref[...], h, preferred_element_type=jnp.float32) + b1_ref[...])
    h = _silu(jnp.dot(w2_ref[...], h, preferred_element_type=jnp.float32) + b2_ref[...])
    h = _silu(jnp.dot(w3_ref[...], h, preferred_element_type=jnp.float32) + b3_ref[...])

    # final 16 -> 1 layer as VPU multiply + sublane reduce (avoids an N=1 MXU pass)
    # w4_ref: (16, 1), h: (16, TB) -> y: (1, TB)
    y = jnp.sum(w4_ref[...] * h, axis=0, keepdims=True) + b4_ref[...]

    # reward_diff=True -> Tanh head; output is lane-dense (1, TB)
    out_ref[...] = jnp.tanh(y).astype(out_ref.dtype)


def _round_up(n, m):
    return ((n + m - 1) // m) * m


def reward_model_forward(x, params, *, block_b=512):
    """x: (B, 52) float32.  params: list of (W (out,in), b (out,)).  Returns (B,)."""
    B, F = x.shape
    F_PAD = 64                                   # 52 -> 64 for aligned sublane tiles

    # batch tile: multiple of 128 lanes, capped at block_b
    TB = min(block_b, _round_up(B, 128))
    B_pad = _round_up(B, TB)

    # layout plumbing in the wrapper (transpose + zero-pad); kernel sees (64, B_pad)
    xt = jnp.transpose(x).astype(jnp.float32)    # (F, B)
    xt = jnp.pad(xt, ((0, F_PAD - F), (0, B_pad - B)))

    (w0, b0), (w1, b1), (w2, b2), (w3, b3), (w4, b4) = params
    w0p = jnp.pad(w0, ((0, 0), (0, F_PAD - F)))  # (16, 64), padded cols multiply zeros
    flat = [
        w0p,           b0.reshape(16, 1),
        w1,            b1.reshape(16, 1),
        w2,            b2.reshape(16, 1),
        w3,            b3.reshape(16, 1),
        w4.T,          b4.reshape(1, 1),         # w4: (1,16) -> (16,1)
    ]

    # weights/biases: constant block index -> resident in VMEM across all grid steps
    weight_specs = [pl.BlockSpec(a.shape, lambda i: (0, 0)) for a in flat]

    grid = (B_pad // TB,)
    out = pl.pallas_call(
        reward_mlp_kernel,
        out_shape=jax.ShapeDtypeStruct((1, B_pad), jnp.float32),
        grid=grid,
        in_specs=[pl.BlockSpec((F_PAD, TB), lambda i: (0, i))] + weight_specs,
        out_specs=pl.BlockSpec((1, TB), lambda i: (0, i)),
        compiler_params=pltpu.CompilerParams(
            dimension_semantics=("parallel",),   # shard batch tiles across TCs on v7x
        ),
    )(xt, *flat)

    # torch: x.squeeze() on (B, 1) -> (B,)
    return out[0, :B]


def init_params(key):
    """Deterministic init of the 5 Linear layers, torch layout: W (out,in), b (out,)."""
    dims = [(52, 16), (16, 16), (16, 16), (16, 16), (16, 1)]
    params = []
    for fan_in, fan_out in dims:
        kw, kb, key = jax.random.split(key, 3)
        bound = 1.0 / jnp.sqrt(fan_in)
        w = jax.random.uniform(kw, (fan_out, fan_in), jnp.float32, -bound, bound)
        b = jax.random.uniform(kb, (fan_out,), jnp.float32, -bound, bound)
        params.append((w, b))
    return params


def reference_forward(x, params):
    h = x
    for w, b in params[:-1]:
        h = h @ w.T + b
        h = h * jax.nn.sigmoid(h)
    w, b = params[-1]
    y = jnp.tanh(h @ w.T + b)
    return jnp.squeeze(y, axis=-1)


if __name__ == "__main__":
    key = jax.random.PRNGKey(0)
    kx, kp = jax.random.split(key)

    B = 8
    x = jax.random.normal(kx, (B, 52), jnp.float32)
    params = init_params(kp)

    out = reward_model_forward(x, params)
    out = jax.block_until_ready(out)

    ref = reference_forward(x, params)
    assert out.shape == (B,), out.shape
    assert jnp.allclose(out, ref, atol=1e-5, rtol=1e-5), (out, ref)

    print("KERNEL_OK")
</pallas_src>

<mosaic_0001>
module attributes {stable_mosaic.version = 11 : i64} {
  func.func @reward_mlp_kernel(%arg0: i32, %arg1: memref<64x128xf32, #tpu.memory_space<vmem>>, %arg2: memref<16x64xf32, #tpu.memory_space<vmem>>, %arg3: memref<16x1xf32, #tpu.memory_space<vmem>>, %arg4: memref<16x16xf32, #tpu.memory_space<vmem>>, %arg5: memref<16x1xf32, #tpu.memory_space<vmem>>, %arg6: memref<16x16xf32, #tpu.memory_space<vmem>>, %arg7: memref<16x1xf32, #tpu.memory_space<vmem>>, %arg8: memref<16x16xf32, #tpu.memory_space<vmem>>, %arg9: memref<16x1xf32, #tpu.memory_space<vmem>>, %arg10: memref<16x1xf32, #tpu.memory_space<vmem>>, %arg11: memref<1x1xf32, #tpu.memory_space<vmem>>, %arg12: memref<1x128xf32, #tpu.memory_space<vmem>>) attributes {dimension_semantics = [#tpu.dimension_semantics<parallel>], iteration_bounds = array<i64: 1>, scalar_prefetch = 0 : i64, scratch_operands = 0 : i64, tpu.core_type = #tpu.core_type<tc>, window_params = [{transform_indices = @transform_0, window_bounds = array<i64: 64, 128>}, {pipeline_mode = #tpu.pipeline_mode<synchronous>, transform_indices = @transform_1, window_bounds = array<i64: 16, 64>}, {pipeline_mode = #tpu.pipeline_mode<synchronous>, transform_indices = @transform_2, window_bounds = array<i64: 16, 1>}, {pipeline_mode = #tpu.pipeline_mode<synchronous>, transform_indices = @transform_3, window_bounds = array<i64: 16, 16>}, {pipeline_mode = #tpu.pipeline_mode<synchronous>, transform_indices = @transform_4, window_bounds = array<i64: 16, 1>}, {pipeline_mode = #tpu.pipeline_mode<synchronous>, transform_indices = @transform_5, window_bounds = array<i64: 16, 16>}, {pipeline_mode = #tpu.pipeline_mode<synchronous>, transform_indices = @transform_6, window_bounds = array<i64: 16, 1>}, {pipeline_mode = #tpu.pipeline_mode<synchronous>, transform_indices = @transform_7, window_bounds = array<i64: 16, 16>}, {pipeline_mode = #tpu.pipeline_mode<synchronous>, transform_indices = @transform_8, window_bounds = array<i64: 16, 1>}, {pipeline_mode = #tpu.pipeline_mode<synchronous>, transform_indices = @transform_9, window_bounds = array<i64: 16, 1>}, {pipeline_mode = #tpu.pipeline_mode<synchronous>, transform_indices = @transform_10, window_bounds = array<i64: 1, 1>}, {transform_indices = @transform_11, window_bounds = array<i64: 1, 128>}]} {
    %c0 = arith.constant 0 : index
    %c0_0 = arith.constant 0 : index
    %0 = vector.load %arg1[%c0, %c0_0] : memref<64x128xf32, #tpu.memory_space<vmem>>, vector<64x128xf32>
    %c0_1 = arith.constant 0 : index
    %c0_2 = arith.constant 0 : index
    %1 = vector.load %arg2[%c0_1, %c0_2] : memref<16x64xf32, #tpu.memory_space<vmem>>, vector<16x64xf32>
    %cst = arith.constant dense<0.000000e+00> : vector<16x128xf32>
    %2 = tpu.matmul %1, %0, %cst {dimension_numbers = #tpu.dot_dimension_numbers<[1], [0], [0], [1], [0, 0, 1, 1], [], []>} : vector<16x64xf32>, vector<64x128xf32>, vector<16x128xf32> -> vector<16x128xf32>
    %c0_3 = arith.constant 0 : index
    %c0_4 = arith.constant 0 : index
    %3 = vector.load %arg3[%c0_3, %c0_4] : memref<16x1xf32, #tpu.memory_space<vmem>>, vector<16x1xf32>
    %4 = vector.broadcast %3 : vector<16x1xf32> to vector<16x128xf32>
    %5 = arith.addf %2, %4 : vector<16x128xf32>
    %6 = arith.negf %5 : vector<16x128xf32>
    %7 = math.exp %6 : vector<16x128xf32>
    %cst_5 = arith.constant 1.000000e+00 : f32
    %8 = vector.broadcast %cst_5 : f32 to vector<16x128xf32>
    %9 = arith.addf %8, %7 : vector<16x128xf32>
    %10 = arith.divf %8, %9 : vector<16x128xf32>
    %11 = arith.mulf %5, %10 : vector<16x128xf32>
    %c0_6 = arith.constant 0 : index
    %c0_7 = arith.constant 0 : index
    %12 = vector.load %arg4[%c0_6, %c0_7] : memref<16x16xf32, #tpu.memory_space<vmem>>, vector<16x16xf32>
    %cst_8 = arith.constant dense<0.000000e+00> : vector<16x128xf32>
    %13 = tpu.matmul %12, %11, %cst_8 {dimension_numbers = #tpu.dot_dimension_numbers<[1], [0], [0], [1], [0, 0, 1, 1], [], []>} : vector<16x16xf32>, vector<16x128xf32>, vector<16x128xf32> -> vector<16x128xf32>
    %c0_9 = arith.constant 0 : index
    %c0_10 = arith.constant 0 : index
    %14 = vector.load %arg5[%c0_9, %c0_10] : memref<16x1xf32, #tpu.memory_space<vmem>>, vector<16x1xf32>
    %15 = vector.broadcast %14 : vector<16x1xf32> to vector<16x128xf32>
    %16 = arith.addf %13, %15 : vector<16x128xf32>
    %17 = arith.negf %16 : vector<16x128xf32>
    %18 = math.exp %17 : vector<16x128xf32>
    %cst_11 = arith.constant 1.000000e+00 : f32
    %19 = vector.broadcast %cst_11 : f32 to vector<16x128xf32>
    %20 = arith.addf %19, %18 : vector<16x128xf32>
    %21 = arith.divf %19, %20 : vector<16x128xf32>
    %22 = arith.mulf %16, %21 : vector<16x128xf32>
    %c0_12 = arith.constant 0 : index
    %c0_13 = arith.constant 0 : index
    %23 = vector.load %arg6[%c0_12, %c0_13] : memref<16x16xf32, #tpu.memory_space<vmem>>, vector<16x16xf32>
    %cst_14 = arith.constant dense<0.000000e+00> : vector<16x128xf32>
    %24 = tpu.matmul %23, %22, %cst_14 {dimension_numbers = #tpu.dot_dimension_numbers<[1], [0], [0], [1], [0, 0, 1, 1], [], []>} : vector<16x16xf32>, vector<16x128xf32>, vector<16x128xf32> -> vector<16x128xf32>
    %c0_15 = arith.constant 0 : index
    %c0_16 = arith.constant 0 : index
    %25 = vector.load %arg7[%c0_15, %c0_16] : memref<16x1xf32, #tpu.memory_space<vmem>>, vector<16x1xf32>
    %26 = vector.broadcast %25 : vector<16x1xf32> to vector<16x128xf32>
    %27 = arith.addf %24, %26 : vector<16x128xf32>
    %28 = arith.negf %27 : vector<16x128xf32>
    %29 = math.exp %28 : vector<16x128xf32>
    %cst_17 = arith.constant 1.000000e+00 : f32
    %30 = vector.broadcast %cst_17 : f32 to vector<16x128xf32>
    %31 = arith.addf %30, %29 : vector<16x128xf32>
    %32 = arith.divf %30, %31 : vector<16x128xf32>
    %33 = arith.mulf %27, %32 : vector<16x128xf32>
    %c0_18 = arith.constant 0 : index
    %c0_19 = arith.constant 0 : index
    %34 = vector.load %arg8[%c0_18, %c0_19] : memref<16x16xf32, #tpu.memory_space<vmem>>, vector<16x16xf32>
    %cst_20 = arith.constant dense<0.000000e+00> : vector<16x128xf32>
    %35 = tpu.matmul %34, %33, %cst_20 {dimension_numbers = #tpu.dot_dimension_numbers<[1], [0], [0], [1], [0, 0, 1, 1], [], []>} : vector<16x16xf32>, vector<16x128xf32>, vector<16x128xf32> -> vector<16x128xf32>
    %c0_21 = arith.constant 0 : index
    %c0_22 = arith.constant 0 : index
    %36 = vector.load %arg9[%c0_21, %c0_22] : memref<16x1xf32, #tpu.memory_space<vmem>>, vector<16x1xf32>
    %37 = vector.broadcast %36 : vector<16x1xf32> to vector<16x128xf32>
    %38 = arith.addf %35, %37 : vector<16x128xf32>
    %39 = arith.negf %38 : vector<16x128xf32>
    %40 = math.exp %39 : vector<16x128xf32>
    %cst_23 = arith.constant 1.000000e+00 : f32
    %41 = vector.broadcast %cst_23 : f32 to vector<16x128xf32>
    %42 = arith.addf %41, %40 : vector<16x128xf32>
    %43 = arith.divf %41, %42 : vector<16x128xf32>
    %44 = arith.mulf %38, %43 : vector<16x128xf32>
    %c0_24 = arith.constant 0 : index
    %c0_25 = arith.constant 0 : index
    %45 = vector.load %arg10[%c0_24, %c0_25] : memref<16x1xf32, #tpu.memory_space<vmem>>, vector<16x1xf32>
    %46 = vector.broadcast %45 : vector<16x1xf32> to vector<16x128xf32>
    %47 = arith.mulf %46, %44 : vector<16x128xf32>
    %cst_26 = arith.constant dense<0.000000e+00> : vector<128xf32>
    %48 = vector.multi_reduction <add>, %47, %cst_26 [0] : vector<16x128xf32> to vector<128xf32>
    %49 = vector.shape_cast %48 : vector<128xf32> to vector<1x128xf32>
    %c0_27 = arith.constant 0 : index
    %c0_28 = arith.constant 0 : index
    %50 = vector.load %arg11[%c0_27, %c0_28] : memref<1x1xf32, #tpu.memory_space<vmem>>, vector<1x1xf32>
    %51 = vector.broadcast %50 : vector<1x1xf32> to vector<1x128xf32>
    %52 = arith.addf %49, %51 : vector<1x128xf32>
    %53 = math.tanh %52 : vector<1x128xf32>
    %c0_29 = arith.constant 0 : index
    %c0_30 = arith.constant 0 : index
    %54 = vector.load %arg12[%c0_29, %c0_30] : memref<1x128xf32, #tpu.memory_space<vmem>>, vector<1x128xf32>
    tpu.vector_store %arg12[%c0_29, %c0_30], %53 {strides = array<i32>} : memref<1x128xf32, #tpu.memory_space<vmem>>, vector<1x128xf32>,
    return
  }
  func.func @transform_0(%arg0: i32) -> (i32, i32) {
    %c0_i32 = arith.constant 0 : i32
    %c0_i32_0 = arith.constant 0 : i32
    return %c0_i32, %arg0 : i32, i32
  }
  func.func @transform_1(%arg0: i32) -> (i32, i32) {
    %c0_i32 = arith.constant 0 : i32
    %c0_i32_0 = arith.constant 0 : i32
    %c0_i32_1 = arith.constant 0 : i32
    return %c0_i32, %c0_i32_0 : i32, i32
  }
  func.func @transform_2(%arg0: i32) -> (i32, i32) {
    %c0_i32 = arith.constant 0 : i32
    %c0_i32_0 = arith.constant 0 : i32
    %c0_i32_1 = arith.constant 0 : i32
    return %c0_i32, %c0_i32_0 : i32, i32
  }
  func.func @transform_3(%arg0: i32) -> (i32, i32) {
    %c0_i32 = arith.constant 0 : i32
    %c0_i32_0 = arith.constant 0 : i32
    %c0_i32_1 = arith.constant 0 : i32
    return %c0_i32, %c0_i32_0 : i32, i32
  }
  func.func @transform_4(%arg0: i32) -> (i32, i32) {
    %c0_i32 = arith.constant 0 : i32
    %c0_i32_0 = arith.constant 0 : i32
    %c0_i32_1 = arith.constant 0 : i32
    return %c0_i32, %c0_i32_0 : i32, i32
  }
  func.func @transform_5(%arg0: i32) -> (i32, i32) {
    %c0_i32 = arith.constant 0 : i32
    %c0_i32_0 = arith.constant 0 : i32
    %c0_i32_1 = arith.constant 0 : i32
    return %c0_i32, %c0_i32_0 : i32, i32
  }
  func.func @transform_6(%arg0: i32) -> (i32, i32) {
    %c0_i32 = arith.constant 0 : i32
    %c0_i32_0 = arith.constant 0 : i32
    %c0_i32_1 = arith.constant 0 : i32
    return %c0_i32, %c0_i32_0 : i32, i32
  }
  func.func @transform_7(%arg0: i32) -> (i32, i32) {
    %c0_i32 = arith.constant 0 : i32
    %c0_i32_0 = arith.constant 0 : i32
    %c0_i32_1 = arith.constant 0 : i32
    return %c0_i32, %c0_i32_0 : i32, i32
  }
  func.func @transform_8(%arg0: i32) -> (i32, i32) {
    %c0_i32 = arith.constant 0 : i32
    %c0_i32_0 = arith.constant 0 : i32
    %c0_i32_1 = arith.constant 0 : i32
    return %c0_i32, %c0_i32_0 : i32, i32
  }
  func.func @transform_9(%arg0: i32) -> (i32, i32) {
    %c0_i32 = arith.constant 0 : i32
    %c0_i32_0 = arith.constant 0 : i32
    %c0_i32_1 = arith.constant 0 : i32
    return %c0_i32, %c0_i32_0 : i32, i32
  }
  func.func @transform_10(%arg0: i32) -> (i32, i32) {
    %c0_i32 = arith.constant 0 : i32
    %c0_i32_0 = arith.constant 0 : i32
    %c0_i32_1 = arith.constant 0 : i32
    return %c0_i32, %c0_i32_0 : i32, i32
  }
  func.func @transform_11(%arg0: i32) -> (i32, i32) {
    %c0_i32 = arith.constant 0 : i32
    %c0_i32_0 = arith.constant 0 : i32
    return %c0_i32, %arg0 : i32, i32
  }
}

</mosaic_0001>

<bundles_post_ra>
// kernel: tpu_custom_call.1
= control target key start
LH: loop header
LB: loop body
LE: loop exit
PB: predicated region body
PF: predicated region fallthrough
CT: control target
= control target key end

     0   :  { %s917_s0 = inlined_call_operand.vmem [shape: f32[64,128], index: 0, kind: input, shape index: {}]   ;;  %s918_s1 = inlined_call_operand.vmem [shape: f32[16,64], index: 1, kind: input, shape index: {}]   ;;  %s919_s2 = inlined_call_operand.vmem [shape: f32[16,1], index: 2, kind: input, shape index: {}]   ;;  %s920_s3 = inlined_call_operand.vmem [shape: f32[16,16], index: 3, kind: input, shape index: {}]   ;;  %s921_s4 = inlined_call_operand.vmem [shape: f32[16,1], index: 4, kind: input, shape index: {}]   ;;  %s922_s5 = inlined_call_operand.hbm [shape: f32[16,16], index: 5, kind: input, shape index: {}]   ;;  %s923_s6 = inlined_call_operand.vmem [shape: f32[16,1], index: 6, kind: input, shape index: {}]   ;;  %s924_s7 = inlined_call_operand.vmem [shape: f32[16,16], index: 7, kind: input, shape index: {}]   ;;  %s925_s8 = inlined_call_operand.vmem [shape: f32[16,1], index: 8, kind: input, shape index: {}]   ;;  %s926_s9 = inlined_call_operand.vmem [shape: f32[16,1], index: 9, kind: input, shape index: {}]   ;;  %s927_s10 = inlined_call_operand.<no memory space> [shape: f32[1,1], index: 10, kind: input, shape index: {}]   ;;  %s928_s11 = inlined_call_operand.hbm [shape: f32[1,128], index: 11, kind: output, shape index: {}]  }
   0x1   :  { %v16_v0 = vstv %s927_s10 }
   0x2   :  { %17 = vst [vmem:[#allocation2] sm:$0x1] %v16_v0 }
   0x3   :  { %18 = vsyncpa [#allocation4], 0 }
   0x4   :  { %19 = vsyncpa [#allocation5], 0  ;;  %s745_s19 = smov [#allocation3]   ;;  %s697_s23 = scalar_lea.hbm %s922_s5, 256 }
   0x5   :  { %s35_s20 = sshll.u32 %s745_s19, 4  ;;  %p698_p0 = scmp.ne.s32.totalorder %s922_s5, %s697_s23  ;;  %s36_s20 = int_to_ptr.vmem [resolvable:$true] %s35_s20 }
   0x6   :  { %p701_p1 = scmp.lt.u32.totalorder %s697_s23, %s922_s5 }
   0x8   :  { %p703_p2 = pnand %p701_p1, %p698_p0 }
   0xa   :  { %706 = shalt.err (!%p703_p2)
}
   0xb   :  { %s707_s10 = scalar_lea.vmem %s36_s20, 256  ;;  %p712_p4 = scmp.lt.s32.totalorder %s36_s20, %s36_s20 }
   0xc   :  { %p708_p3 = scmp.ne.s32.totalorder %s36_s20, %s707_s10  ;;  %p713_p5 = scmp.lt.s32.totalorder %s707_s10, %s707_s10 }
   0xe   :  { %p714_p6 = por %p713_p5, %p712_p4 }
  0x10   :  { %p715_p7 = pnand %p714_p6, %p708_p3 }
  0x12   :  { %718 = shalt.err (!%p715_p7)
}
  0x13   :  { %s746_s28 = smov 128   ;;  %s747_s29 = smov 8  }
  0x14   :  { %41 = dma.hbm_to_vmem [thread:$0]  %s922_s5, 256, %s36_s20, [#allocation4], %s746_s28, %s746_s28, %s747_s29  }
  0x15   :  { %741 = dma.done.wait [#allocation4], 256  }
  0x16   :  { %742 = vsyncadd [#allocation4], 4294967040  ;;  %v748_v1 = vmov 0   ;;  %v55_v2 = vld [vmem:[%s917_s0] sm:$0xff]  ;;  %v56_v3 = vld [vmem:[%s917_s0 + $0x8] sm:$0xff]  ;;  %vm77_vm0 = vcmask 523264  }
  0x17   :  { %661 = vset.pattern.permute.xlu0 %v748_v1  ;;  %662 = vset.pattern.permute.xlu1 %v748_v1  ;;  %v57_v4 = vld [vmem:[%s917_s0 + $0x10] sm:$0xff]  ;;  %v628_v5 = vpack.c.bf16 %v56_v3, %v55_v2  ;;  %v58_v6 = vld [vmem:[%s917_s0 + $0x18] sm:$0xff]  ;;  %v59_v8 = vld [vmem:[%s917_s0 + $0x20] sm:$0xff]  ;;  %vm187_vm1 = vcmask 130048  }
  0x18   :  { %v632_v7 = vpack.c.bf16 %v58_v6, %v57_v4  ;;  %v60_v9 = vld [vmem:[%s917_s0 + $0x28] sm:$0xff]  ;;  %v63_v10 = vld [vmem:[%s918_s1] sm:$0xff]  ;;  %v61_v14 = vld [vmem:[%s917_s0 + $0x30] sm:$0xff] }
  0x19   :  { %629 = vmatprep.subr.bf16.mxu0 %v628_v5  ;;  %604 = vmatprep.mubr.msk.f32.mxu0 %vm77_vm0, %v63_v10  ;;  %v65_v11 = vld [vmem:[%s919_s2] sm:$0xff]  ;;  %v636_v12 = vpack.c.bf16 %v60_v9, %v59_v8  ;;  %v66_v13 = vld [vmem:[%s919_s2 + $0x8] sm:$0xff]  ;;  %v62_v15 = vld [vmem:[%s917_s0 + $0x38] sm:$0xff] }
  0x1a   :  { %631 = vmatpush3.bf16.msra.mxu0 %v628_v5  ;;  %69 = vperm.xlu0 %661, %v65_v11   ;;  %v640_v16 = vpack.c.bf16 %v62_v15, %v61_v14  ;;  %v285_v17 = vld [vmem:[%s923_s6] sm:$0xff]  ;;  %v64_v19 = vld [vmem:[%s918_s1 + $0x8] sm:$0xff] }
  0x1b   :  { %633 = vmatprep.subr.bf16.mxu0 %v632_v7  ;;  %v394_v18 = vld [vmem:[%s925_s8] sm:$0xff]  ;;  %v176_v24 = vld [vmem:[%s921_s4 + $0x8] sm:$0xff] }
  0x1c   :  { %v501_v20 = vld [vmem:[%s926_s9] sm:$0xff]  ;;  %v286_v25 = vld [vmem:[%s923_s6 + $0x8] sm:$0xff] }
  0x1d   :  { %v522_v21 = vld [vmem:[#allocation2] sm:$0x1]  ;;  %v395_v26 = vld [vmem:[%s925_s8 + $0x8] sm:$0xff] }
  0x1e   :  { %635 = vmatpush3.bf16.msra.mxu0 %v632_v7  ;;  %74 = vperm.xlu0 %661, %v66_v13   ;;  %v173_v22 = vld [vmem:[%s920_s3] sm:$0xff]  ;;  %v502_v27 = vld [vmem:[%s926_s9 + $0x8] sm:$0xff] }
  0x1f   :  { %637 = vmatprep.subr.bf16.mxu0 %v636_v12  ;;  %611 = vmatprep.mubr.msk.f32.mxu1 %vm187_vm1, %v173_v22  ;;  %v175_v23 = vld [vmem:[%s921_s4] sm:$0xff]  ;;  %v174_v45 = vld [vmem:[%s920_s3 + $0x8] sm:$0xff] }
  0x20   :  { %179 = vperm.xlu1 %662, %v175_v23   ;;  %v283_v46 = vld [vmem:[#allocation3] sm:$0xff]  ;;  %v284_v0 = vld [vmem:[#allocation3 + $0x8] sm:$0xff] }
  0x21   :  { %v392_v1 = vld [vmem:[%s924_s7] sm:$0xff] }
  0x22   :  { %639 = vmatpush3.bf16.msra.mxu0 %v636_v12  ;;  %289 = vperm.xlu0 %661, %v285_v17  }
  0x23   :  { %641 = vmatprep.subr.bf16.mxu0 %v640_v16 }
  0x24   :  { %184 = vperm.xlu1 %662, %v176_v24  }
  0x26   :  { %643 = vmatpush3.bf16.msra.mxu0 %v640_v16  ;;  %398 = vperm.xlu0 %661, %v394_v18  }
  0x28   :  { %294 = vperm.xlu1 %662, %v286_v25  }
  0x29   :  { %605 = vmatmul.mubr.msk.f32.vlgmr.msra.gmra.mrb[0].mxu0 %vm77_vm0, %v64_v19  ;;  %v393_v19 = vld [vmem:[%s924_s7 + $0x8] sm:$0xff]  ;;  %s749_s7 = smov [#allocation6]  }
  0x2a   :  { %505 = vperm.xlu0 %661, %v501_v20   ;;  %s541_s30 = sshll.u32 %s749_s7, 4  ;;  %s542_s30 = int_to_ptr.vmem [resolvable:$true] %s541_s30 }
  0x2b   :  { %s719_s12 = scalar_lea.vmem %s542_s30, 16  ;;  %s723_s13 = scalar_lea.vmem %s542_s30, 32 }
  0x2c   :  { %403 = vperm.xlu1 %662, %v395_v26   ;;  %p720_p8 = scmp.ne.s32.totalorder %s542_s30, %s719_s12  ;;  %p724_p9 = scmp.lt.s32.totalorder %s542_s30, %s542_s30 }
  0x2d   :  { %p725_p10 = scmp.lt.s32.totalorder %s723_s13, %s719_s12 }
  0x2e   :  { %525 = vperm.xlu0 %661, %v522_v21  }
  0x2f   :  { %p726_p11 = por %p725_p10, %p724_p9 }
  0x30   :  { %510 = vperm.xlu1 %662, %v502_v27  }
  0x31   :  { %p727_p12 = pnand %p726_p11, %p720_p8 }
  0x99   :  { %v70_v28 = vpop.permute.xlu0 %69 }
  0x9d   :  { %v75_v29 = vpop.permute.xlu0 %74 }
  0x9f   :  { %v180_v47 = vpop.permute.xlu1 %179 }
  0xa1   :  { %v290_v4 = vpop.permute.xlu0 %289 }
  0xa3   :  { %v185_v48 = vpop.permute.xlu1 %184 }
  0xa5   :  { %v399_v22 = vpop.permute.xlu0 %398 }
  0xa7   :  { %v295_v2 = vpop.permute.xlu1 %294 }
  0xab   :  { %v404_v20 = vpop.permute.xlu1 %403 }
  0xfc   :  { %v606_v30 = vpop.f32.mrb[0].mxu0 }
  0xfd   :  { %v156_v31 = vadd.f32 %v606_v30, %v75_v29  ;;  %v150_v32 = vpop.f32.mrb[1].mxu0 }
  0xfe   :  { %v151_v33 = vadd.f32 %v150_v32, %v70_v28 }
  0xff   :  { %v553_v34 = vmul.f32 -1.442695, %v156_v31 }
 0x100   :  { %v552_v35 = vmul.f32 -1.442695, %v151_v33 }
 0x101   :  { %663 = vpow2.f32 %v553_v34 }
 0x102   :  { %665 = vpow2.f32 %v552_v35  ;;  %v511_v35 = vpop.permute.xlu1 %510 }
 0x10b   :  { %v664_v36 = vpop.eup %663 }
 0x10c   :  { %v666_v37 = vpop.eup %665  ;;  %v166_v38 = vadd.f32 1.0, %v664_v36 }
 0x10d   :  { %v165_v39 = vadd.f32 1.0, %v666_v37  ;;  %v506_v37 = vpop.permute.xlu0 %505 }
 0x10e   :  { %667 = vrcp.f32 %v166_v38 }
 0x10f   :  { %669 = vrcp.f32 %v165_v39 }
 0x118   :  { %v668_v40 = vpop.eup %667 }
 0x119   :  { %v670_v41 = vpop.eup %669  ;;  %v172_v42 = vmul.f32 %v668_v40, %v156_v31  ;;  %v528_v40 = vlaneseq }
 0x11a   :  { %v171_v43 = vmul.f32 %v670_v41, %v151_v33 }
 0x11c   :  { %v644_v44 = vpack.c.bf16 %v172_v42, %v171_v43  ;;  %v529_v43 = vshrl.u32 %v528_v40, 7 }
 0x11e   :  { %645 = vmatprep.subr.bf16.mxu1 %v644_v44 }
 0x11f   :  { %647 = vmatpush3.bf16.msra.mxu1 %v644_v44 }
 0x122   :  { %612 = vmatmul.mubr.msk.f32.vlgmr.msra.gmra.mrb[0].mxu1 %vm187_vm1, %v174_v45 }
 0x123   :  { %618 = vmatprep.mubr.msk.f32.mxu1 %vm187_vm1, %v283_v46  ;;  %v530_v46 = vsub.s32 0, %v529_v43 }
 0x1f5   :  { %v613_v49 = vpop.f32.mrb[0].mxu1 }
 0x1f6   :  { %v266_v50 = vadd.f32 %v613_v49, %v185_v48  ;;  %v260_v51 = vpop.f32.mrb[1].mxu1  ;;  %v526_v48 = vpop.permute.xlu0 %525 }
 0x1f7   :  { %v261_v52 = vadd.f32 %v260_v51, %v180_v47 }
 0x1f8   :  { %v557_v53 = vmul.f32 -1.442695, %v266_v50 }
 0x1f9   :  { %v556_v54 = vmul.f32 -1.442695, %v261_v52 }
 0x1fa   :  { %671 = vpow2.f32 %v557_v53 }
 0x1fb   :  { %673 = vpow2.f32 %v556_v54 }
 0x204   :  { %v672_v55 = vpop.eup %671 }
 0x205   :  { %v674_v56 = vpop.eup %673  ;;  %v276_v57 = vadd.f32 1.0, %v672_v55 }
 0x206   :  { %v275_v58 = vadd.f32 1.0, %v674_v56 }
 0x207   :  { %675 = vrcp.f32 %v276_v57 }
 0x208   :  { %677 = vrcp.f32 %v275_v58 }
 0x211   :  { %v676_v59 = vpop.eup %675 }
 0x212   :  { %v678_v60 = vpop.eup %677  ;;  %v282_v61 = vmul.f32 %v676_v59, %v266_v50  ;;  %v531_v50 = vrot.slane %v526_v48, %v530_v46 }
 0x213   :  { %v281_v62 = vmul.f32 %v678_v60, %v261_v52 }
 0x215   :  { %v648_v63 = vpack.c.bf16 %v282_v61, %v281_v62 }
 0x217   :  { %649 = vmatprep.subr.bf16.mxu1 %v648_v63 }
 0x218   :  { %651 = vmatpush3.bf16.msra.mxu1 %v648_v63 }
 0x21b   :  { %619 = vmatmul.mubr.msk.f32.vlgmr.msra.gmra.mrb[2].mxu1 %vm187_vm1, %v284_v0 }
 0x21c   :  { %625 = vmatprep.mubr.msk.f32.mxu1 %vm187_vm1, %v392_v1 }
 0x2ee   :  { %v620_v3 = vpop.f32.mrb[2].mxu1 }
 0x2ef   :  { %v375_v5 = vadd.f32 %v620_v3, %v295_v2  ;;  %v369_v6 = vpop.f32.mrb[3].mxu1 }
 0x2f0   :  { %v370_v7 = vadd.f32 %v369_v6, %v290_v4 }
 0x2f1   :  { %v561_v8 = vmul.f32 -1.442695, %v375_v5 }
 0x2f2   :  { %v560_v9 = vmul.f32 -1.442695, %v370_v7 }
 0x2f3   :  { %679 = vpow2.f32 %v561_v8 }
 0x2f4   :  { %681 = vpow2.f32 %v560_v9 }
 0x2fd   :  { %v680_v10 = vpop.eup %679 }
 0x2fe   :  { %v682_v11 = vpop.eup %681  ;;  %v385_v12 = vadd.f32 1.0, %v680_v10 }
 0x2ff   :  { %v384_v13 = vadd.f32 1.0, %v682_v11 }
 0x300   :  { %683 = vrcp.f32 %v385_v12 }
 0x301   :  { %685 = vrcp.f32 %v384_v13 }
 0x30a   :  { %v684_v14 = vpop.eup %683 }
 0x30b   :  { %v686_v15 = vpop.eup %685  ;;  %v391_v16 = vmul.f32 %v684_v14, %v375_v5 }
 0x30c   :  { %v390_v17 = vmul.f32 %v686_v15, %v370_v7 }
 0x30e   :  { %v652_v18 = vpack.c.bf16 %v391_v16, %v390_v17 }
 0x310   :  { %653 = vmatprep.subr.bf16.mxu1 %v652_v18 }
 0x311   :  { %655 = vmatpush3.bf16.msra.mxu1 %v652_v18 }
 0x314   :  { %626 = vmatmul.mubr.msk.f32.vlgmr.msra.gmra.mrb[4].mxu1 %vm187_vm1, %v393_v19 }
 0x3e7   :  { %v627_v21 = vpop.f32.mrb[4].mxu1 }
 0x3e8   :  { %v484_v23 = vadd.f32 %v627_v21, %v404_v20  ;;  %v478_v24 = vpop.f32.mrb[5].mxu1 }
 0x3e9   :  { %v479_v25 = vadd.f32 %v478_v24, %v399_v22 }
 0x3ea   :  { %v565_v26 = vmul.f32 -1.442695, %v484_v23 }
 0x3eb   :  { %v564_v27 = vmul.f32 -1.442695, %v479_v25 }
 0x3ec   :  { %687 = vpow2.f32 %v565_v26 }
 0x3ed   :  { %689 = vpow2.f32 %v564_v27 }
 0x3f6   :  { %v688_v28 = vpop.eup %687 }
 0x3f7   :  { %v690_v29 = vpop.eup %689  ;;  %v494_v30 = vadd.f32 1.0, %v688_v28 }
 0x3f8   :  { %v493_v31 = vadd.f32 1.0, %v690_v29 }
 0x3f9   :  { %691 = vrcp.f32 %v494_v30 }
 0x3fa   :  { %693 = vrcp.f32 %v493_v31 }
 0x403   :  { %v692_v32 = vpop.eup %691 }
 0x404   :  { %v694_v33 = vpop.eup %693  ;;  %v500_v34 = vmul.f32 %v692_v32, %v484_v23 }
 0x405   :  { %v499_v36 = vmul.f32 %v694_v33, %v479_v25 }
 0x406   :  { %v514_v38 = vmul.f32 %v511_v35, %v500_v34 }
 0x407   :  { %v513_v39 = vmul.f32 %v506_v37, %v499_v36 }
 0x409   :  { %v515_v41 = vadd.f32 %v514_v38, %v513_v39 }
 0x40b   :  { %v516_v42 = vrot.slane %v515_v41, 4 }
 0x40d   :  { %v517_v44 = vadd.f32 %v516_v42, %v515_v41 }
 0x40f   :  { %v518_v45 = vrot.slane %v517_v44, 2 }
 0x411   :  { %v519_v47 = vadd.f32 %v518_v45, %v517_v44 }
 0x413   :  { %v520_v49 = vrot.slane %v519_v47, 1 }
 0x415   :  { %v521_v51 = vadd.f32 %v520_v49, %v519_v47 }
 0x417   :  { %v532_v52 = vadd.f32 %v531_v50, %v521_v51 }
 0x419   :  { %695 = vtanh.f32 %v532_v52 }
 0x423   :  { %v696_v53 = vpop.eup %695 }
 0x424   :  { %534 = vst [vmem:[#allocation6] sm:$0x1] %v696_v53 }
 0x425   :  { %730 = shalt.err (!%p727_p12)
}
 0x426   :  { %s731_s2 = scalar_lea.hbm %s928_s11, 16 }
 0x427   :  { %p732_p13 = scmp.ne.s32.totalorder %s928_s11, %s731_s2  ;;  %p735_p0 = scmp.lt.u32.totalorder %s731_s2, %s928_s11 }
 0x429   :  { %p737_p1 = pnand %p735_p0, %p732_p13 }
 0x42b   :  { %740 = shalt.err (!%p737_p1)
}
 0x42c   :  { %544 = dma.vmem_to_hbm [thread:$0]  %s542_s30, 16, %s928_s11, [#allocation5]  }
 0x42d   :  { %743 = dma.done.wait [#allocation5], 16  }
 0x42e   :  { %744 = vsyncadd [#allocation5], 4294967280 }
 0x42f   :  { %548 = vsyncpa [#allocation4], 1 }
 0x430   :  { %549 = vsyncpa [#allocation5], 1 }

</bundles_post_ra>
